<compile_context>
chip_gen: v7x
topology: tpu7x:2x2x1
jax: 0.10.0
libtpu: 0.0.40
codegen_flags: <defaults>
</compile_context>

<pallas_src>
import jax
import jax.numpy as jnp
from jax.experimental import pallas as pl
from jax.experimental.pallas import tpu as pltpu

# ---- small, module-consistent config -----------------------------------
HIDDEN = 32                 # hidden_size
ITEM_NUM = 64               # item_num  (padding index == ITEM_NUM)
STATE_SIZE = 8              # state_size (sequence length L)
NUM_FILTERS = 4             # num_filters per horizontal filter size
FILTER_SIZES = [2, 3, 4]    # eval('[2,3,4]')
NUM_FILTERS_TOTAL = NUM_FILTERS * len(FILTER_SIZES)          # 12
FINAL_DIM = NUM_FILTERS_TOTAL + HIDDEN                       # 44
DROPOUT_RATE = 0.5          # eval-mode dropout == identity

FS_MAX = max(FILTER_SIZES)          # 4
K_CONV = FS_MAX * HIDDEN            # 128  (im2col contraction dim)
OUT_PAD = 128                       # lane-dense padded feature / logits width

# Set to jnp.bfloat16 on v6e/v7x when MXU-bound (keep f32 accumulation via
# preferred_element_type); f32 kept here so the exact-tolerance check passes.
COMPUTE_DTYPE = jnp.float32


def _round_up(x, m):
    return (x + m - 1) // m * m


# ---- Pallas kernel ------------------------------------------------------
def make_caser_kernel(tb, seq_len):
    def kernel(x_ref, emb_ref, wconv_ref, bconv_ref, tneg_ref,
               wv_ref, bv_ref, wfc_ref, bfc_ref, out_ref):
        # --- horizontal convs, all filter sizes fused: one im2col matmul ---
        # x_ref: (tb*L, 4H=128) windows, wconv: (128, 128) zero-padded weights.
        s = jnp.dot(x_ref[...], wconv_ref[...],
                    preferred_element_type=jnp.float32)          # (tb*L, 128)
        s = s.reshape(tb, seq_len, OUT_PAD)
        # additive -1e30 mask kills time positions the original conv never evaluates
        s = s + tneg_ref[...][None, :, :]
        pooled = jnp.max(s, axis=1)                               # (tb, 128)
        # bias-after-max + relu-after-max == original relu(conv+b) then max (monotone)
        pooled = jnp.maximum(pooled + bconv_ref[...], 0.0)

        # --- vertical conv Conv2d(1,1,(L,1)) as one matmul ---
        v = jnp.dot(emb_ref[...], wv_ref[...],
                    preferred_element_type=jnp.float32)           # (tb, 128)
        v = jnp.maximum(v + bv_ref[...], 0.0)

        # pooled has zeros in the v lanes, v has zeros in the conv lanes:
        # feat == concat([h_pool_flat, v_flat]) zero-padded to 128 lanes.
        feat = (pooled + v).astype(wfc_ref.dtype)

        # --- fused final Linear (lane-dense N=128, K=128) ---
        # TODO(synk): nn.Dropout is stochastic in train mode; eval-mode identity here.
        logits = jnp.dot(feat, wfc_ref[...],
                         preferred_element_type=jnp.float32) + bfc_ref[...]
        out_ref[...] = logits.astype(out_ref.dtype)

    return kernel


# ---- parameter preparation: build the fused / padded kernel operands -----
def prepare_kernel_params(params, compute_dtype=COMPUTE_DTYPE):
    H, L, F = HIDDEN, STATE_SIZE, NUM_FILTERS

    # Horizontal conv weights -> (4H, 128), biases -> (1, 128), time mask -> (L, 128)
    wconv = jnp.zeros((K_CONV, OUT_PAD), jnp.float32)
    bconv = jnp.zeros((1, OUT_PAD), jnp.float32)
    tneg = jnp.zeros((L, OUT_PAD), jnp.float32)
    for i, fs in enumerate(FILTER_SIZES):
        w = params["h_w"][i].reshape(fs * H, F)                  # (fs*H, F)
        wconv = wconv.at[:fs * H, i * F:(i + 1) * F].set(w)
        bconv = bconv.at[0, i * F:(i + 1) * F].set(params["h_b"][i][0])
        tneg = tneg.at[L - fs + 1:, i * F:(i + 1) * F].set(-1e30)

    # Vertical conv -> expanded (L*H, 128) weight at the v-feature lanes.
    eye = jnp.eye(H, dtype=jnp.float32)
    vblk = (params["v_w"][:, None, None] * eye[None]).reshape(L * H, H)
    wv = jnp.zeros((L * H, OUT_PAD), jnp.float32)
    wv = wv.at[:, NUM_FILTERS_TOTAL:NUM_FILTERS_TOTAL + H].set(vblk)
    bv = jnp.zeros((1, OUT_PAD), jnp.float32)
    bv = bv.at[0, NUM_FILTERS_TOTAL:NUM_FILTERS_TOTAL + H].set(params["v_b"][0])

    # Final Linear -> (128, 128), zero rows for pad lanes, zero cols >= ITEM_NUM.
    wfc = jnp.zeros((OUT_PAD, OUT_PAD), jnp.float32)
    wfc = wfc.at[:FINAL_DIM, :ITEM_NUM].set(params["fc_w"].T)
    bfc = jnp.zeros((1, OUT_PAD), jnp.float32)
    bfc = bfc.at[0, :ITEM_NUM].set(params["fc_b"])

    return {
        "wconv": wconv.astype(compute_dtype),
        "bconv": bconv,
        "tneg": tneg,
        "wv": wv.astype(compute_dtype),
        "bv": bv,
        "wfc": wfc.astype(compute_dtype),
        "bfc": bfc,
    }


# ---- wrapper ------------------------------------------------------------
def caser_forward(states, len_states, params, kparams,
                  compute_dtype=COMPUTE_DTYPE):
    del len_states  # unused (matches the PyTorch forward signature)
    B, L = states.shape
    assert L == STATE_SIZE

    # Embedding lookup + padding mask (glue in plain JAX; lane-dense layouts only,
    # no (B,L,H)->(L,B,H) transpose).
    emb = params["item_embeddings"][states]                       # (B, L, H)
    mask = (states != ITEM_NUM).astype(emb.dtype)[..., None]
    emb = emb * mask

    # Pad batch to >=8 sublanes and to a multiple of the batch tile; grid over tiles.
    B_pad = _round_up(B, 8)
    TB = min(B_pad, 128)
    B_pad = _round_up(B_pad, TB)
    if B_pad != B:
        emb = jnp.pad(emb, ((0, B_pad - B), (0, 0), (0, 0)))

    # im2col windows: x[b*L + t, dh*H + h] = emb[b, t+dh, h] (zero beyond the sequence).
    emb_win = jnp.pad(emb, ((0, 0), (0, FS_MAX - 1), (0, 0)))     # (B_pad, L+3, H)
    x = jnp.stack([emb_win[:, d:d + L, :] for d in range(FS_MAX)], axis=2)
    x = x.reshape(B_pad * L, K_CONV).astype(compute_dtype)        # (B_pad*L, 128)
    emb_slab = emb.reshape(B_pad, L * HIDDEN).astype(compute_dtype)  # (B_pad, 256)

    grid = (B_pad // TB,)
    const_map = lambda b: (0, 0)

    out = pl.pallas_call(
        make_caser_kernel(TB, L),
        out_shape=jax.ShapeDtypeStruct((B_pad, OUT_PAD), jnp.float32),
        grid=grid,
        in_specs=[
            pl.BlockSpec((TB * L, K_CONV), lambda b: (b, 0)),         # x (im2col)
            pl.BlockSpec((TB, L * HIDDEN), lambda b: (b, 0)),         # emb slab
            pl.BlockSpec((K_CONV, OUT_PAD), const_map),               # wconv
            pl.BlockSpec((1, OUT_PAD), const_map),                    # bconv
            pl.BlockSpec((L, OUT_PAD), const_map),                    # tneg mask
            pl.BlockSpec((L * HIDDEN, OUT_PAD), const_map),           # wv
            pl.BlockSpec((1, OUT_PAD), const_map),                    # bv
            pl.BlockSpec((OUT_PAD, OUT_PAD), const_map),              # wfc
            pl.BlockSpec((1, OUT_PAD), const_map),                    # bfc
        ],
        out_specs=pl.BlockSpec((TB, OUT_PAD), lambda b: (b, 0)),
        compiler_params=pltpu.CompilerParams(
            dimension_semantics=("parallel",)),                       # 2 TCs on v7x
    )(x, emb_slab, kparams["wconv"], kparams["bconv"], kparams["tneg"],
      kparams["wv"], kparams["bv"], kparams["wfc"], kparams["bfc"])

    # Slice off batch padding and the 64 zero lanes added for lane-dense stores.
    return out[:B, :ITEM_NUM]


# ---- deterministic parameter init (mirrors nn.Module __init__ shapes) ----
def init_params(key):
    ks = jax.random.split(key, 8 + len(FILTER_SIZES))
    params = {}
    # nn.Embedding(item_num+1, hidden), init N(0, 0.01)
    params["item_embeddings"] = 0.01 * jax.random.normal(
        ks[0], (ITEM_NUM + 1, HIDDEN), jnp.float32)

    # Horizontal convs: torch weight (F, 1, fs, H) -> stored as (fs, H, F).
    h_w, h_b = [], []
    for i, fs in enumerate(FILTER_SIZES):
        fan_in = 1 * fs * HIDDEN
        fan_out = NUM_FILTERS * fs * HIDDEN
        std = (2.0 / (fan_in + fan_out)) ** 0.5          # xavier_normal_
        h_w.append(std * jax.random.normal(ks[1 + i], (fs, HIDDEN, NUM_FILTERS),
                                           jnp.float32))
        h_b.append(jnp.full((1, NUM_FILTERS), 0.1, jnp.float32))
    params["h_w"], params["h_b"] = h_w, h_b

    # Vertical conv: torch weight (1,1,L,1) -> (L,), bias 0.1.
    std_v = (2.0 / (STATE_SIZE + STATE_SIZE)) ** 0.5
    params["v_w"] = std_v * jax.random.normal(ks[5], (STATE_SIZE,), jnp.float32)
    params["v_b"] = jnp.full((1,), 0.1, jnp.float32)

    # s_fc: Linear(final_dim, item_num); torch weight (item_num, final_dim).
    bound = 1.0 / (FINAL_DIM ** 0.5)
    params["fc_w"] = jax.random.uniform(ks[6], (ITEM_NUM, FINAL_DIM), jnp.float32,
                                        -bound, bound)
    params["fc_b"] = jax.random.uniform(ks[7], (ITEM_NUM,), jnp.float32,
                                        -bound, bound)
    return params


# ---- pure-JAX reference (sanity check of the Pallas lowering) ------------
def reference_forward(states, params):
    emb = params["item_embeddings"][states]
    mask = (states != ITEM_NUM).astype(jnp.float32)[..., None]
    emb = emb * mask                                             # (B, L, H)
    feats = []
    for i, fs in enumerate(FILTER_SIZES):
        convs = []
        for t in range(STATE_SIZE - fs + 1):
            window = emb[:, t:t + fs, :]                         # (B, fs, H)
            convs.append(jnp.einsum("bfh,fhk->bk", window, params["h_w"][i])
                         + params["h_b"][i])
        conv = jnp.maximum(jnp.stack(convs, axis=1), 0.0)        # (B, T, F)
        feats.append(conv.max(axis=1))                           # (B, F)
    v = jnp.einsum("blh,l->bh", emb, params["v_w"]) + params["v_b"][0]
    v = jnp.maximum(v, 0.0)
    feat = jnp.concatenate(feats + [v], axis=1)                  # (B, 44)
    return feat @ params["fc_w"].T + params["fc_b"]


if __name__ == "__main__":
    key = jax.random.PRNGKey(0)
    pkey, skey = jax.random.split(key)
    params = init_params(pkey)
    kparams = prepare_kernel_params(params)

    B = 2
    states = jax.random.randint(skey, (B, STATE_SIZE), 0, ITEM_NUM + 1,
                                dtype=jnp.int32)   # includes padding id == ITEM_NUM
    len_states = jnp.full((B,), STATE_SIZE, jnp.int32)

    out = caser_forward(states, len_states, params, kparams)
    out = jax.block_until_ready(out)
    assert out.shape == (B, ITEM_NUM)

    ref = reference_forward(states, params)
    err = float(jnp.max(jnp.abs(out - ref)))
    assert err < 1e-4, f"mismatch vs reference: {err}"

    print("KERNEL_OK")
</pallas_src>

<mosaic_0001>
module attributes {stable_mosaic.version = 11 : i64} {
  func.func @kernel(%arg0: i32, %arg1: memref<64x128xf32, #tpu.memory_space<vmem>>, %arg2: memref<8x256xf32, #tpu.memory_space<vmem>>, %arg3: memref<128x128xf32, #tpu.memory_space<vmem>>, %arg4: memref<1x128xf32, #tpu.memory_space<vmem>>, %arg5: memref<8x128xf32, #tpu.memory_space<vmem>>, %arg6: memref<256x128xf32, #tpu.memory_space<vmem>>, %arg7: memref<1x128xf32, #tpu.memory_space<vmem>>, %arg8: memref<128x128xf32, #tpu.memory_space<vmem>>, %arg9: memref<1x128xf32, #tpu.memory_space<vmem>>, %arg10: memref<8x128xf32, #tpu.memory_space<vmem>>) attributes {dimension_semantics = [#tpu.dimension_semantics<parallel>], iteration_bounds = array<i64: 1>, scalar_prefetch = 0 : i64, scratch_operands = 0 : i64, tpu.core_type = #tpu.core_type<tc>, window_params = [{transform_indices = @transform_0, window_bounds = array<i64: 64, 128>}, {transform_indices = @transform_1, window_bounds = array<i64: 8, 256>}, {pipeline_mode = #tpu.pipeline_mode<synchronous>, transform_indices = @transform_2, window_bounds = array<i64: 128, 128>}, {pipeline_mode = #tpu.pipeline_mode<synchronous>, transform_indices = @transform_3, window_bounds = array<i64: 1, 128>}, {pipeline_mode = #tpu.pipeline_mode<synchronous>, transform_indices = @transform_4, window_bounds = array<i64: 8, 128>}, {pipeline_mode = #tpu.pipeline_mode<synchronous>, transform_indices = @transform_5, window_bounds = array<i64: 256, 128>}, {pipeline_mode = #tpu.pipeline_mode<synchronous>, transform_indices = @transform_6, window_bounds = array<i64: 1, 128>}, {pipeline_mode = #tpu.pipeline_mode<synchronous>, transform_indices = @transform_7, window_bounds = array<i64: 128, 128>}, {pipeline_mode = #tpu.pipeline_mode<synchronous>, transform_indices = @transform_8, window_bounds = array<i64: 1, 128>}, {transform_indices = @transform_9, window_bounds = array<i64: 8, 128>}]} {
    %c0 = arith.constant 0 : index
    %c0_0 = arith.constant 0 : index
    %0 = vector.load %arg1[%c0, %c0_0] : memref<64x128xf32, #tpu.memory_space<vmem>>, vector<64x128xf32>
    %c0_1 = arith.constant 0 : index
    %c0_2 = arith.constant 0 : index
    %1 = vector.load %arg3[%c0_1, %c0_2] : memref<128x128xf32, #tpu.memory_space<vmem>>, vector<128x128xf32>
    %cst = arith.constant dense<0.000000e+00> : vector<64x128xf32>
    %2 = tpu.matmul %0, %1, %cst {dimension_numbers = #tpu.dot_dimension_numbers<[1], [0], [0], [1], [0, 0, 1, 1], [], []>} : vector<64x128xf32>, vector<128x128xf32>, vector<64x128xf32> -> vector<64x128xf32>
    %3 = vector.shape_cast %2 : vector<64x128xf32> to vector<8x8x128xf32>
    %c0_3 = arith.constant 0 : index
    %c0_4 = arith.constant 0 : index
    %4 = vector.load %arg5[%c0_3, %c0_4] : memref<8x128xf32, #tpu.memory_space<vmem>>, vector<8x128xf32>
    %5 = vector.shape_cast %4 : vector<8x128xf32> to vector<1x8x128xf32>
    %6 = vector.broadcast %5 : vector<1x8x128xf32> to vector<8x8x128xf32>
    %7 = arith.addf %3, %6 : vector<8x8x128xf32>
    %cst_5 = arith.constant dense<0xFF800000> : vector<8x128xf32>
    %8 = vector.multi_reduction <maximumf>, %7, %cst_5 [1] : vector<8x8x128xf32> to vector<8x128xf32>
    %c0_6 = arith.constant 0 : index
    %c0_7 = arith.constant 0 : index
    %9 = vector.load %arg4[%c0_6, %c0_7] : memref<1x128xf32, #tpu.memory_space<vmem>>, vector<1x128xf32>
    %10 = vector.broadcast %9 : vector<1x128xf32> to vector<8x128xf32>
    %11 = arith.addf %8, %10 : vector<8x128xf32>
    %cst_8 = arith.constant 0.000000e+00 : f32
    %12 = vector.broadcast %cst_8 : f32 to vector<8x128xf32>
    %13 = arith.maximumf %11, %12 : vector<8x128xf32>
    %c0_9 = arith.constant 0 : index
    %c0_10 = arith.constant 0 : index
    %14 = vector.load %arg2[%c0_9, %c0_10] : memref<8x256xf32, #tpu.memory_space<vmem>>, vector<8x256xf32>
    %c0_11 = arith.constant 0 : index
    %c0_12 = arith.constant 0 : index
    %15 = vector.load %arg6[%c0_11, %c0_12] : memref<256x128xf32, #tpu.memory_space<vmem>>, vector<256x128xf32>
    %cst_13 = arith.constant dense<0.000000e+00> : vector<8x128xf32>
    %16 = tpu.matmul %14, %15, %cst_13 {dimension_numbers = #tpu.dot_dimension_numbers<[1], [0], [0], [1], [0, 0, 1, 1], [], []>} : vector<8x256xf32>, vector<256x128xf32>, vector<8x128xf32> -> vector<8x128xf32>
    %c0_14 = arith.constant 0 : index
    %c0_15 = arith.constant 0 : index
    %17 = vector.load %arg7[%c0_14, %c0_15] : memref<1x128xf32, #tpu.memory_space<vmem>>, vector<1x128xf32>
    %18 = vector.broadcast %17 : vector<1x128xf32> to vector<8x128xf32>
    %19 = arith.addf %16, %18 : vector<8x128xf32>
    %cst_16 = arith.constant 0.000000e+00 : f32
    %20 = vector.broadcast %cst_16 : f32 to vector<8x128xf32>
    %21 = arith.maximumf %19, %20 : vector<8x128xf32>
    %22 = arith.addf %13, %21 : vector<8x128xf32>
    %c0_17 = arith.constant 0 : index
    %c0_18 = arith.constant 0 : index
    %23 = vector.load %arg8[%c0_17, %c0_18] : memref<128x128xf32, #tpu.memory_space<vmem>>, vector<128x128xf32>
    %cst_19 = arith.constant dense<0.000000e+00> : vector<8x128xf32>
    %24 = tpu.matmul %22, %23, %cst_19 {dimension_numbers = #tpu.dot_dimension_numbers<[1], [0], [0], [1], [0, 0, 1, 1], [], []>} : vector<8x128xf32>, vector<128x128xf32>, vector<8x128xf32> -> vector<8x128xf32>
    %c0_20 = arith.constant 0 : index
    %c0_21 = arith.constant 0 : index
    %25 = vector.load %arg9[%c0_20, %c0_21] : memref<1x128xf32, #tpu.memory_space<vmem>>, vector<1x128xf32>
    %26 = vector.broadcast %25 : vector<1x128xf32> to vector<8x128xf32>
    %27 = arith.addf %24, %26 : vector<8x128xf32>
    %c0_22 = arith.constant 0 : index
    %c0_23 = arith.constant 0 : index
    %28 = vector.load %arg10[%c0_22, %c0_23] : memref<8x128xf32, #tpu.memory_space<vmem>>, vector<8x128xf32>
    tpu.vector_store %arg10[%c0_22, %c0_23], %27 {strides = array<i32>} : memref<8x128xf32, #tpu.memory_space<vmem>>, vector<8x128xf32>,
    return
  }
  func.func @transform_0(%arg0: i32) -> (i32, i32) {
    %c0_i32 = arith.constant 0 : i32
    %c0_i32_0 = arith.constant 0 : i32
    return %arg0, %c0_i32 : i32, i32
  }
  func.func @transform_1(%arg0: i32) -> (i32, i32) {
    %c0_i32 = arith.constant 0 : i32
    %c0_i32_0 = arith.constant 0 : i32
    return %arg0, %c0_i32 : i32, i32
  }
  func.func @transform_2(%arg0: i32) -> (i32, i32) {
    %c0_i32 = arith.constant 0 : i32
    %c0_i32_0 = arith.constant 0 : i32
    %c0_i32_1 = arith.constant 0 : i32
    return %c0_i32, %c0_i32_0 : i32, i32
  }
  func.func @transform_3(%arg0: i32) -> (i32, i32) {
    %c0_i32 = arith.constant 0 : i32
    %c0_i32_0 = arith.constant 0 : i32
    %c0_i32_1 = arith.constant 0 : i32
    return %c0_i32, %c0_i32_0 : i32, i32
  }
  func.func @transform_4(%arg0: i32) -> (i32, i32) {
    %c0_i32 = arith.constant 0 : i32
    %c0_i32_0 = arith.constant 0 : i32
    %c0_i32_1 = arith.constant 0 : i32
    return %c0_i32, %c0_i32_0 : i32, i32
  }
  func.func @transform_5(%arg0: i32) -> (i32, i32) {
    %c0_i32 = arith.constant 0 : i32
    %c0_i32_0 = arith.constant 0 : i32
    %c0_i32_1 = arith.constant 0 : i32
    return %c0_i32, %c0_i32_0 : i32, i32
  }
  func.func @transform_6(%arg0: i32) -> (i32, i32) {
    %c0_i32 = arith.constant 0 : i32
    %c0_i32_0 = arith.constant 0 : i32
    %c0_i32_1 = arith.constant 0 : i32
    return %c0_i32, %c0_i32_0 : i32, i32
  }
  func.func @transform_7(%arg0: i32) -> (i32, i32) {
    %c0_i32 = arith.constant 0 : i32
    %c0_i32_0 = arith.constant 0 : i32
    %c0_i32_1 = arith.constant 0 : i32
    return %c0_i32, %c0_i32_0 : i32, i32
  }
  func.func @transform_8(%arg0: i32) -> (i32, i32) {
    %c0_i32 = arith.constant 0 : i32
    %c0_i32_0 = arith.constant 0 : i32
    %c0_i32_1 = arith.constant 0 : i32
    return %c0_i32, %c0_i32_0 : i32, i32
  }
  func.func @transform_9(%arg0: i32) -> (i32, i32) {
    %c0_i32 = arith.constant 0 : i32
    %c0_i32_0 = arith.constant 0 : i32
    return %arg0, %c0_i32 : i32, i32
  }
}

</mosaic_0001>

<bundles_post_ra>
// kernel: tpu_custom_call.1
= control target key start
LH: loop header
LB: loop body
LE: loop exit
PB: predicated region body
PF: predicated region fallthrough
CT: control target
= control target key end

     0   :  { %14 = vsyncpa [#allocation3], 0  ;;  %s1161_s0 = inlined_call_operand.hbm [shape: f32[64,128], index: 0, kind: input, shape index: {}]   ;;  %s1162_s1 = inlined_call_operand.hbm [shape: f32[8,256], index: 1, kind: input, shape index: {}]   ;;  %s1163_s2 = inlined_call_operand.hbm [shape: f32[128,128], index: 2, kind: input, shape index: {}]   ;;  %s1164_s3 = inlined_call_operand.vmem [shape: f32[1,128], index: 3, kind: input, shape index: {}]   ;;  %s1165_s4 = inlined_call_operand.vmem [shape: f32[8,128], index: 4, kind: input, shape index: {}]   ;;  %s1166_s5 = inlined_call_operand.hbm [shape: f32[256,128], index: 5, kind: input, shape index: {}]   ;;  %s1167_s6 = inlined_call_operand.vmem [shape: f32[1,128], index: 6, kind: input, shape index: {}]   ;;  %s1168_s7 = inlined_call_operand.hbm [shape: f32[128,128], index: 7, kind: input, shape index: {}]   ;;  %s1169_s8 = inlined_call_operand.vmem [shape: f32[1,128], index: 8, kind: input, shape index: {}]   ;;  %s1170_s9 = inlined_call_operand.hbm [shape: f32[8,128], index: 9, kind: output, shape index: {}]  }
   0x1   :  { %15 = vsyncpa [#allocation6], 0 }
   0x2   :  { %16 = vsyncpa [#allocation9], 0 }
   0x3   :  { %17 = vsyncpa [#allocation4], 0  ;;  %s982_s30 = smov [#allocation5]   ;;  %s842_s13 = scalar_lea.hbm %s1162_s1, 256 }
   0x4   :  { %s36_s10 = sshll.u32 %s982_s30, 4  ;;  %p843_p0 = scmp.ne.s32.totalorder %s1162_s1, %s842_s13  ;;  %s37_s10 = int_to_ptr.vmem [resolvable:$true] %s36_s10 }
   0x5   :  { %p846_p1 = scmp.lt.u32.totalorder %s842_s13, %s1162_s1 }
   0x7   :  { %p848_p2 = pnand %p846_p1, %p843_p0 }
   0x9   :  { %851 = shalt.err (!%p848_p2)
}
   0xa   :  { %s852_s18 = scalar_lea.vmem %s37_s10, 256  ;;  %p857_p4 = scmp.lt.s32.totalorder %s37_s10, %s37_s10 }
   0xb   :  { %p853_p3 = scmp.ne.s32.totalorder %s37_s10, %s852_s18  ;;  %p858_p5 = scmp.lt.s32.totalorder %s852_s18, %s852_s18 }
   0xd   :  { %p859_p6 = por %p858_p5, %p857_p4 }
   0xf   :  { %p860_p7 = pnand %p859_p6, %p853_p3 }
  0x11   :  { %863 = shalt.err (!%p860_p7)
}
  0x12   :  { %39 = dma.hbm_to_vmem [thread:$0]  %s1162_s1, 256, %s37_s10, [#allocation6]  }
  0x13   :  { %s983_s21 = smov [#allocation8]   ;;  %s984_s23 = smov [#allocation2]  }
  0x14   :  { %s61_s22 = sshll.u32 %s983_s21, 4  ;;  %s23_s24 = sshll.u32 %s984_s23, 4  ;;  %s62_s22 = int_to_ptr.vmem [resolvable:$true] %s61_s22  ;;  %s24_s24 = int_to_ptr.vmem [resolvable:$true] %s23_s24 }
  0x15   :  { %s864_s27 = scalar_lea.hbm %s1166_s5, 4096 }
  0x16   :  { %p865_p8 = scmp.ne.s32.totalorder %s1166_s5, %s864_s27  ;;  %p868_p9 = scmp.lt.u32.totalorder %s864_s27, %s1166_s5 }
  0x18   :  { %p870_p10 = pnand %p868_p9, %p865_p8 }
  0x1a   :  { %873 = shalt.err (!%p870_p10)
}
  0x1b   :  { %s874_s1 = scalar_lea.vmem %s62_s22, 4096  ;;  %p879_p12 = scmp.lt.s32.totalorder %s62_s22, %s62_s22 }
  0x1c   :  { %p875_p11 = scmp.ne.s32.totalorder %s62_s22, %s874_s1  ;;  %p880_p13 = scmp.lt.s32.totalorder %s874_s1, %s874_s1 }
  0x1e   :  { %p881_p0 = por %p880_p13, %p879_p12 }
  0x20   :  { %p882_p1 = pnand %p881_p0, %p875_p11 }
  0x22   :  { %885 = shalt.err (!%p882_p1)
}
  0x23   :  { %s985_s10 = smov 128   ;;  %s986_s12 = smov 8  }
  0x24   :  { %67 = dma.hbm_to_vmem [thread:$0]  %s1166_s5, 4096, %s62_s22, [#allocation9], %s985_s10, %s985_s10, %s986_s12  }
  0x25   :  { %s886_s17 = scalar_lea.hbm %s1161_s0, 1024 }
  0x26   :  { %p887_p2 = scmp.ne.s32.totalorder %s1161_s0, %s886_s17  ;;  %p890_p3 = scmp.lt.u32.totalorder %s886_s17, %s1161_s0 }
  0x28   :  { %p892_p4 = pnand %p890_p3, %p887_p2 }
  0x2a   :  { %895 = shalt.err (!%p892_p4)
}
  0x2b   :  { %s896_s23 = scalar_lea.vmem %s24_s24, 1024  ;;  %p901_p6 = scmp.lt.s32.totalorder %s24_s24, %s24_s24 }
  0x2c   :  { %p897_p5 = scmp.ne.s32.totalorder %s24_s24, %s896_s23  ;;  %p902_p7 = scmp.lt.s32.totalorder %s896_s23, %s896_s23 }
  0x2e   :  { %p903_p8 = por %p902_p7, %p901_p6 }
  0x30   :  { %p904_p9 = pnand %p903_p8, %p897_p5 }
  0x32   :  { %907 = shalt.err (!%p904_p9)
}
  0x33   :  { %29 = dma.hbm_to_vmem [thread:$0]  %s1161_s0, 1024, %s24_s24, [#allocation3], %s985_s10, %s985_s10, %s986_s12  }
  0x34   :  { %s987_s25 = smov [#allocation7]   ;;  %s988_s27 = smov [#allocation10]  }
  0x35   :  { %s45_s26 = sshll.u32 %s987_s25, 4  ;;  %s75_s28 = sshll.u32 %s988_s27, 4  ;;  %s46_s26 = int_to_ptr.vmem [resolvable:$true] %s45_s26  ;;  %s76_s28 = int_to_ptr.vmem [resolvable:$true] %s75_s28 }
  0x36   :  { %s908_s11 = scalar_lea.hbm %s1163_s2, 2048 }
  0x37   :  { %p909_p10 = scmp.ne.s32.totalorder %s1163_s2, %s908_s11  ;;  %p912_p11 = scmp.lt.u32.totalorder %s908_s11, %s1163_s2 }
  0x39   :  { %p914_p12 = pnand %p912_p11, %p909_p10 }
  0x3b   :  { %917 = shalt.err (!%p914_p12)
}
  0x3c   :  { %s918_s0 = scalar_lea.vmem %s46_s26, 2048  ;;  %p923_p0 = scmp.lt.s32.totalorder %s46_s26, %s46_s26 }
  0x3d   :  { %p919_p13 = scmp.ne.s32.totalorder %s46_s26, %s918_s0  ;;  %p924_p1 = scmp.lt.s32.totalorder %s918_s0, %s918_s0 }
  0x3f   :  { %p925_p2 = por %p924_p1, %p923_p0 }
  0x41   :  { %p926_p3 = pnand %p925_p2, %p919_p13 }
  0x43   :  { %929 = shalt.err (!%p926_p3)
}
  0x44   :  { %51 = dma.hbm_to_vmem [thread:$0]  %s1163_s2, 2048, %s46_s26, [#allocation6], %s985_s10, %s985_s10, %s986_s12  }
  0x45   :  { %s930_s19 = scalar_lea.hbm %s1168_s7, 2048 }
  0x46   :  { %p931_p4 = scmp.ne.s32.totalorder %s1168_s7, %s930_s19  ;;  %p934_p5 = scmp.lt.u32.totalorder %s930_s19, %s1168_s7 }
  0x48   :  { %p936_p6 = pnand %p934_p5, %p931_p4 }
  0x4a   :  { %939 = shalt.err (!%p936_p6)
}
  0x4b   :  { %s940_s22 = scalar_lea.vmem %s76_s28, 2048  ;;  %p945_p8 = scmp.lt.s32.totalorder %s76_s28, %s76_s28 }
  0x4c   :  { %p941_p7 = scmp.ne.s32.totalorder %s76_s28, %s940_s22  ;;  %p946_p9 = scmp.lt.s32.totalorder %s940_s22, %s940_s22 }
  0x4e   :  { %p947_p10 = por %p946_p9, %p945_p8 }
  0x50   :  { %p948_p11 = pnand %p947_p10, %p941_p7 }
  0x52   :  { %951 = shalt.err (!%p948_p11)
}
  0x53   :  { %81 = dma.hbm_to_vmem [thread:$0]  %s1168_s7, 2048, %s76_s28, [#allocation9], %s985_s10, %s985_s10, %s986_s12  }
  0x54   :  { %974 = dma.done.wait [#allocation3], 1024  }
  0x55   :  { %975 = vsyncadd [#allocation3], 4294966272 }
  0x56   :  { %976 = dma.done.wait [#allocation6], 2304  }
  0x57   :  { %977 = vsyncadd [#allocation6], 4294964992 }
  0x58   :  { %978 = dma.done.wait [#allocation9], 6144  }
  0x59   :  { %979 = vsyncadd [#allocation9], 4294961152  ;;  %v107_v0 = vld [vmem:[#allocation7] sm:$0xff]  ;;  %v108_v1 = vld [vmem:[#allocation7 + $0x8] sm:$0xff]  ;;  %vm990_vm0 = vmmov 0   ;;  %vm476_vm1 = vcmask 1041409  }
  0x5a   :  { %v109_v2 = vld [vmem:[#allocation7 + $0x10] sm:$0xff]  ;;  %v743_v3 = vpack.c.bf16 %v108_v1, %v107_v0  ;;  %v110_v4 = vld [vmem:[#allocation7 + $0x18] sm:$0xff]  ;;  %v111_v5 = vld [vmem:[#allocation7 + $0x20] sm:$0xff]  ;;  %vm479_vm2 = vcmask 1042434   ;;  %vm482_vm3 = vcmask 1043459   ;;  %vm485_vm4 = vcmask 1044484  }
  0x5b   :  { %v112_v6 = vld [vmem:[#allocation7 + $0x28] sm:$0xff]  ;;  %v747_v7 = vpack.c.bf16 %v110_v4, %v109_v2  ;;  %v326_v8 = vld [vmem:[#allocation8 + $0x80] sm:$0xff]  ;;  %v328_v14 = vld [vmem:[#allocation8 + $0x90] sm:$0xff]  ;;  %vm488_vm5 = vcmask 1045509   ;;  %vm491_vm6 = vcmask 1046534   ;;  %vm494_vm7 = vcmask 1047559  }
  0x5c   :  { %v327_v9 = vld [vmem:[#allocation8 + $0x88] sm:$0xff]  ;;  %v310_v10 = vld [vmem:[#allocation8] sm:$0xff]  ;;  %744 = vmatprep.subr.bf16.mxu0 %v743_v3  ;;  %v329_v15 = vld [vmem:[#allocation8 + $0x98] sm:$0xff]  ;;  %v751_v17 = vpack.c.bf16 %v112_v6, %v111_v5  ;;  %s992_s28 = smov [#allocation11]  }
  0x5d   :  { %v775_v11 = vpack.c.bf16 %v327_v9, %v326_v8  ;;  %v311_v12 = vld [vmem:[#allocation8 + $0x8] sm:$0xff]  ;;  %746 = vmatpush3.bf16.msra.mxu0 %v743_v3  ;;  %v312_v16 = vld [vmem:[#allocation8 + $0x10] sm:$0xff]  ;;  %v779_v19 = vpack.c.bf16 %v329_v15, %v328_v14  ;;  %v313_v20 = vld [vmem:[#allocation8 + $0x18] sm:$0xff]  ;;  %s574_s29 = sshll.u32 %s992_s28, 4  ;;  %s575_s29 = int_to_ptr.vmem [resolvable:$true] %s574_s29 }
  0x5e   :  { %v777_v13 = vpack.c.bf16 %v311_v12, %v310_v10  ;;  %748 = vmatprep.subr.bf16.mxu0 %v747_v7  ;;  %v113_v18 = vld [vmem:[#allocation7 + $0x30] sm:$0xff]  ;;  %v114_v21 = vld [vmem:[#allocation7 + $0x38] sm:$0xff]  ;;  %v781_v22 = vpack.c.bf16 %v313_v20, %v312_v16  ;;  %v330_v23 = vld [vmem:[#allocation8 + $0xa0] sm:$0xff]  ;;  %s952_s30 = scalar_lea.vmem %s575_s29, 128  ;;  %p957_p13 = scmp.lt.s32.totalorder %s575_s29, %s575_s29 }
  0x5f   :  { %776 = vmatprep.subr.bf16.mxu1 %v775_v11  ;;  %v331_v24 = vld [vmem:[#allocation8 + $0xa8] sm:$0xff]  ;;  %v314_v26 = vld [vmem:[#allocation8 + $0x20] sm:$0xff]  ;;  %v332_v28 = vld [vmem:[#allocation8 + $0xb0] sm:$0xff]  ;;  %v755_v30 = vpack.c.bf16 %v114_v21, %v113_v18  ;;  %v989_v21 = vmov 0.0|0.0   ;;  %p953_p12 = scmp.ne.s32.totalorder %s575_s29, %s952_s30  ;;  %p958_p0 = scmp.lt.s32.totalorder %s952_s30, %s952_s30 }
  0x60   :  { %778 = vmatpush3.bf16.msra.mxu1 %v777_v13  ;;  %v783_v25 = vpack.c.bf16 %v331_v24, %v330_v23  ;;  %v315_v27 = vld [vmem:[#allocation8 + $0x28] sm:$0xff]  ;;  %v333_v29 = vld [vmem:[#allocation8 + $0xb8] sm:$0xff]  ;;  %v115_v31 = vld [vmem:[#allocation7 + $0x40] sm:$0xff] }
  0x61   :  { %780 = vmatprep.subr.bf16.mxu1 %v779_v19  ;;  %750 = vmatpush3.bf16.msra.mxu0 %v747_v7  ;;  %v116_v32 = vld [vmem:[#allocation7 + $0x48] sm:$0xff]  ;;  %v785_v33 = vpack.c.bf16 %v315_v27, %v314_v26  ;;  %v787_v34 = vpack.c.bf16 %v333_v29, %v332_v28  ;;  %v316_v35 = vld [vmem:[#allocation8 + $0x30] sm:$0xff]  ;;  %v317_v36 = vld [vmem:[#allocation8 + $0x38] sm:$0xff]  ;;  %p959_p1 = por %p958_p0, %p957_p13 }
  0x62   :  { %752 = vmatprep.subr.bf16.mxu0 %v751_v17  ;;  %v334_v37 = vld [vmem:[#allocation8 + $0xc0] sm:$0xff]  ;;  %v335_v38 = vld [vmem:[#allocation8 + $0xc8] sm:$0xff]  ;;  %v759_v39 = vpack.c.bf16 %v116_v32, %v115_v31  ;;  %v99_v40 = vld [vmem:[#allocation2] sm:$0xff]  ;;  %v789_v43 = vpack.c.bf16 %v317_v36, %v316_v35 }
  0x63   :  { %v117_v41 = vld [vmem:[#allocation7 + $0x50] sm:$0xff]  ;;  %v118_v42 = vld [vmem:[#allocation7 + $0x58] sm:$0xff]  ;;  %696 = vmatprep.mubr.f32.mxu0 %v99_v40  ;;  %v791_v44 = vpack.c.bf16 %v335_v38, %v334_v37  ;;  %v318_v45 = vld [vmem:[#allocation8 + $0x40] sm:$0xff]  ;;  %p960_p2 = pnand %p959_p1, %p953_p12 }
  0x64   :  { %782 = vmatpush3.bf16.msra.mxu1 %v781_v22  ;;  %v319_v46 = vld [vmem:[#allocation8 + $0x48] sm:$0xff]  ;;  %v336_v47 = vld [vmem:[#allocation8 + $0xd0] sm:$0xff]  ;;  %v337_v48 = vld [vmem:[#allocation8 + $0xd8] sm:$0xff]  ;;  %v763_v49 = vpack.c.bf16 %v118_v42, %v117_v41 }
  0x65   :  { %784 = vmatprep.subr.bf16.mxu1 %v783_v25  ;;  %754 = vmatpush3.bf16.msra.mxu0 %v751_v17  ;;  %v119_v50 = vld [vmem:[#allocation7 + $0x60] sm:$0xff]  ;;  %v120_v51 = vld [vmem:[#allocation7 + $0x68] sm:$0xff]  ;;  %v793_v52 = vpack.c.bf16 %v319_v46, %v318_v45  ;;  %v309_v53 = vld [vmem:[#allocation5 + $0x8] sm:$0xff]  ;;  %v795_v54 = vpack.c.bf16 %v337_v48, %v336_v47 }
  0x66   :  { %756 = vmatprep.subr.bf16.mxu0 %v755_v30  ;;  %v320_v55 = vld [vmem:[#allocation8 + $0x50] sm:$0xff]  ;;  %v321_v56 = vld [vmem:[#allocation8 + $0x58] sm:$0xff]  ;;  %413 = vmatprep.mubr.f32.mxu1 %v309_v53  ;;  %v338_v57 = vld [vmem:[#allocation8 + $0xe0] sm:$0xff]  ;;  %v767_v59 = vpack.c.bf16 %v120_v51, %v119_v50 }
  0x67   :  { %v339_v58 = vld [vmem:[#allocation8 + $0xe8] sm:$0xff]  ;;  %v121_v60 = vld [vmem:[#allocation7 + $0x70] sm:$0xff]  ;;  %v122_v61 = vld [vmem:[#allocation7 + $0x78] sm:$0xff]  ;;  %v797_v62 = vpack.c.bf16 %v321_v56, %v320_v55 }
  0x68   :  { %786 = vmatpush3.bf16.msra.mxu1 %v785_v33  ;;  %v799_v63 = vpack.c.bf16 %v339_v58, %v338_v57  ;;  %v322_v0 = vld [vmem:[#allocation8 + $0x60] sm:$0xff]  ;;  %v323_v1 = vld [vmem:[#allocation8 + $0x68] sm:$0xff]  ;;  %v340_v2 = vld [vmem:[#allocation8 + $0xf0] sm:$0xff]  ;;  %v771_v4 = vpack.c.bf16 %v122_v61, %v121_v60 }
  0x69   :  { %788 = vmatprep.subr.bf16.mxu1 %v787_v34  ;;  %758 = vmatpush3.bf16.msra.mxu0 %v755_v30  ;;  %v341_v3 = vld [vmem:[#allocation8 + $0xf8] sm:$0xff]  ;;  %v801_v5 = vpack.c.bf16 %v323_v1, %v322_v0  ;;  %v324_v7 = vld [vmem:[#allocation8 + $0x70] sm:$0xff]  ;;  %v101_v11 = vld [vmem:[#allocation2 + $0x10] sm:$0xff] }
  0x6a   :  { %760 = vmatprep.subr.bf16.mxu0 %v759_v39  ;;  %v803_v6 = vpack.c.bf16 %v341_v3, %v340_v2  ;;  %v325_v8 = vld [vmem:[#allocation8 + $0x78] sm:$0xff]  ;;  %v308_v12 = vld [vmem:[#allocation5] sm:$0xff]  ;;  %v102_v13 = vld [vmem:[#allocation2 + $0x18] sm:$0xff] }
  0x6b   :  { %v805_v9 = vpack.c.bf16 %v325_v8, %v324_v7  ;;  %v100_v10 = vld [vmem:[#allocation2 + $0x8] sm:$0xff]  ;;  %v103_v14 = vld [vmem:[#allocation2 + $0x20] sm:$0xff]  ;;  %v105_v16 = vld [vmem:[#allocation2 + $0x30] sm:$0xff] }
  0x6c   :  { %790 = vmatpush3.bf16.msra.mxu1 %v789_v43  ;;  %v104_v15 = vld [vmem:[#allocation2 + $0x28] sm:$0xff]  ;;  %v106_v17 = vld [vmem:[#allocation2 + $0x38] sm:$0xff]  ;;  %v444_v18 = vld [vmem:[#allocation10] sm:$0xff]  ;;  %v991_v43 = vmov 0.0  }
  0x6d   :  { %792 = vmatprep.subr.bf16.mxu1 %v791_v44  ;;  %762 = vmatpush3.bf16.msra.mxu0 %v759_v39  ;;  %v445_v19 = vld [vmem:[#allocation10 + $0x8] sm:$0xff]  ;;  %v446_v22 = vld [vmem:[#allocation10 + $0x10] sm:$0xff]  ;;  %v447_v23 = vld [vmem:[#allocation10 + $0x18] sm:$0xff] }
  0x6e   :  { %764 = vmatprep.subr.bf16.mxu0 %v763_v49  ;;  %v808_v20 = vpack.c.bf16 %v445_v19, %v444_v18  ;;  %v811_v24 = vpack.c.bf16 %v447_v23, %v446_v22  ;;  %v448_v25 = vld [vmem:[#allocation10 + $0x20] sm:$0xff]  ;;  %v449_v26 = vld [vmem:[#allocation10 + $0x28] sm:$0xff]  ;;  %v450_v28 = vld [vmem:[#allocation10 + $0x30] sm:$0xff] }
  0x6f   :  { %v814_v27 = vpack.c.bf16 %v449_v26, %v448_v25  ;;  %v451_v29 = vld [vmem:[#allocation10 + $0x38] sm:$0xff]  ;;  %v452_v31 = vld [vmem:[#allocation10 + $0x40] sm:$0xff]  ;;  %v453_v32 = vld [vmem:[#allocation10 + $0x48] sm:$0xff] }
  0x70   :  { %794 = vmatpush3.bf16.msra.mxu1 %v793_v52  ;;  %v817_v30 = vpack.c.bf16 %v451_v29, %v450_v28  ;;  %v820_v33 = vpack.c.bf16 %v453_v32, %v452_v31  ;;  %v454_v34 = vld [vmem:[#allocation10 + $0x50] sm:$0xff]  ;;  %v455_v35 = vld [vmem:[#allocation10 + $0x58] sm:$0xff]  ;;  %v456_v37 = vld [vmem:[#allocation10 + $0x60] sm:$0xff] }
  0x71   :  { %796 = vmatprep.subr.bf16.mxu1 %v795_v54  ;;  %766 = vmatpush3.bf16.msra.mxu0 %v763_v49  ;;  %v823_v36 = vpack.c.bf16 %v455_v35, %v454_v34  ;;  %v457_v38 = vld [vmem:[#allocation10 + $0x68] sm:$0xff]  ;;  %v458_v40 = vld [vmem:[#allocation10 + $0x70] sm:$0xff]  ;;  %v459_v41 = vld [vmem:[#allocation10 + $0x78] sm:$0xff] }
  0x72   :  { %768 = vmatprep.subr.bf16.mxu0 %v767_v59  ;;  %v826_v39 = vpack.c.bf16 %v457_v38, %v456_v37  ;;  %v829_v42 = vpack.c.bf16 %v459_v41, %v458_v40  ;;  %v228_v44 = vld [vmem:[%s1165_s4] sm:$0xff] }
  0x73   :  { %v586_v51 = vld [vmem:[%s1167_s6] ss:$0 sm:$0xff] }
  0x74   :  { %798 = vmatpush3.bf16.msra.mxu1 %v797_v62 }
  0x75   :  { %800 = vmatprep.subr.bf16.mxu1 %v799_v63  ;;  %770 = vmatpush3.bf16.msra.mxu0 %v767_v59 }
  0x76   :  { %772 = vmatprep.subr.bf16.mxu0 %v771_v4 }
  0x78   :  { %802 = vmatpush3.bf16.msra.mxu1 %v801_v5 }
  0x79   :  { %804 = vmatprep.subr.bf16.mxu1 %v803_v6  ;;  %774 = vmatpush3.bf16.msra.mxu0 %v771_v4 }
  0x7a   :  { %807 = vmatprep.subr.bf16.mxu0 %v989_v21 }
  0x7c   :  { %806 = vmatpush3.bf16.msra.mxu1 %v805_v9  ;;  %697 = vmatmul.mubr.f32.vlgmr.msra.gmra.mrb[0].mxu0 %v100_v10 }
  0x7d   :  { %699 = vmatprep.mubr.f32.mxu0 %v101_v11  ;;  %809 = vmatpush3.bf16.msra.mxu0 %v808_v20 }
  0x7e   :  { %810 = vmatprep.subr.bf16.mxu0 %v989_v21 }
  0x7f   :  { %414 = vmatmul.mubr.f32.vlgmr.msra.gmra.mrb[0].mxu1 %v308_v12  ;;  %v1126_v12 = vld [vmem:[%s1164_s3] ss:$0 sm:$0xff] }
  0x80   :  { %700 = vmatmul.mubr.f32.gmra.mrb[2].mxu0 %v102_v13 }
  0x81   :  { %702 = vmatprep.mubr.f32.mxu0 %v103_v14  ;;  %812 = vmatpush3.bf16.msra.mxu0 %v811_v24 }
  0x82   :  { %813 = vmatprep.subr.bf16.mxu0 %v989_v21 }
  0x84   :  { %703 = vmatmul.mubr.f32.gmra.mrb[4].mxu0 %v104_v15 }
  0x85   :  { %705 = vmatprep.mubr.f32.mxu0 %v105_v16  ;;  %815 = vmatpush3.bf16.msra.mxu0 %v814_v27 }
  0x86   :  { %816 = vmatprep.subr.bf16.mxu0 %v989_v21 }
  0x88   :  { %706 = vmatmul.mubr.f32.gmra.mrb[6].mxu0 %v106_v17 }
  0x89   :  { %818 = vmatpush3.bf16.msra.mxu0 %v817_v30  ;;  %740 = vmatprep.mubr.msk.f32.mxu0 %vm990_vm0, %v991_v43 }
  0x8a   :  { %819 = vmatprep.subr.bf16.mxu0 %v989_v21 }
  0x8d   :  { %821 = vmatpush3.bf16.msra.mxu0 %v820_v33 }
  0x8e   :  { %822 = vmatprep.subr.bf16.mxu0 %v989_v21 }
  0x91   :  { %824 = vmatpush3.bf16.msra.mxu0 %v823_v36 }
  0x92   :  { %825 = vmatprep.subr.bf16.mxu0 %v989_v21 }
  0x95   :  { %827 = vmatpush3.bf16.msra.mxu0 %v826_v39 }
  0x96   :  { %828 = vmatprep.subr.bf16.mxu0 %v989_v21 }
  0x99   :  { %830 = vmatpush3.bf16.msra.mxu0 %v829_v42 }
 0x14f   :  { %v698_v45 = vpop.f32.mrb[0].mxu0 }
 0x150   :  { %v230_v46 = vadd.f32 %v698_v45, %v228_v44  ;;  %v189_v47 = vpop.f32.mrb[1].mxu0 }
 0x151   :  { %v229_v48 = vadd.f32 %v228_v44, %v189_v47 }
 0x152   :  { %v644_v49 = vpop.f32.mrb[0].mxu1  ;;  %v243_v50 = vrot.slane %v230_v46, 4 }
 0x153   :  { %v645_v52 = vpop.f32.mrb[1].mxu1  ;;  %v237_v53 = vrot.slane %v229_v48, 4  ;;  %v701_v54 = vpop.f32.mrb[2].mxu0 }
 0x154   :  { %v646_v55 = vadd.f32 %v645_v52, %v644_v49  ;;  %v244_v56 = vmax.f32 %v230_v46, %v243_v50  ;;  %v232_v57 = vadd.f32 %v701_v54, %v228_v44  ;;  %v199_v58 = vpop.f32.mrb[3].mxu0 }
 0x155   :  { %v238_v59 = vmax.f32 %v229_v48, %v237_v53  ;;  %v231_v60 = vadd.f32 %v228_v44, %v199_v58 }
 0x156   :  { %v416_v61 = vadd.f32 %v646_v55, %v586_v51  ;;  %v245_v62 = vrot.slane %v244_v56, 2  ;;  %v255_v63 = vrot.slane %v232_v57, 4 }
 0x157   :  { %v239_v0 = vrot.slane %v238_v59, 2  ;;  %v249_v1 = vrot.slane %v231_v60, 4  ;;  %v704_v2 = vpop.f32.mrb[4].mxu0 }
 0x158   :  { %v1121_v3 = vmax.f32 %v416_v61, 0.0  ;;  %v246_v4 = vmax.f32 %v244_v56, %v245_v62  ;;  %v256_v5 = vmax.f32 %v232_v57, %v255_v63  ;;  %v234_v6 = vadd.f32 %v704_v2, %v228_v44  ;;  %v209_v7 = vpop.f32.mrb[5].mxu0 }
 0x159   :  { %v240_v8 = vmax.f32 %v238_v59, %v239_v0  ;;  %v250_v9 = vmax.f32 %v231_v60, %v249_v1  ;;  %v233_v10 = vadd.f32 %v228_v44, %v209_v7 }
 0x15a   :  { %v247_v11 = vrot.slane %v246_v4, 1  ;;  %v257_v13 = vrot.slane %v256_v5, 2  ;;  %v267_v14 = vrot.slane %v234_v6, 4  ;;  %v421_v19 = vrot.slane %v1121_v3, 1 }
 0x15b   :  { %v241_v15 = vrot.slane %v240_v8, 1  ;;  %v251_v16 = vrot.slane %v250_v9, 2  ;;  %v261_v17 = vrot.slane %v233_v10, 4  ;;  %v707_v18 = vpop.f32.mrb[6].mxu0  ;;  %v422_v40 = vrot.slane %v1121_v3, 2 }
 0x15c   :  { %v248_v20 = vmax.f32 %v246_v4, %v247_v11  ;;  %v258_v21 = vmax.f32 %v256_v5, %v257_v13  ;;  %v268_v22 = vmax.f32 %v234_v6, %v267_v14  ;;  %v236_v23 = vadd.f32 %v707_v18, %v228_v44  ;;  %v219_v24 = vpop.f32.mrb[7].mxu0 }
 0x15d   :  { %v242_v25 = vmax.f32 %v240_v8, %v241_v15  ;;  %v252_v26 = vmax.f32 %v250_v9, %v251_v16  ;;  %v262_v27 = vmax.f32 %v233_v10, %v261_v17  ;;  %v235_v28 = vadd.f32 %v228_v44, %v219_v24 }
 0x15e   :  { %v293_v29 = vadd.f32 %v1126_v12, %v248_v20  ;;  %v259_v30 = vrot.slane %v258_v21, 1  ;;  %v269_v31 = vrot.slane %v268_v22, 2  ;;  %v279_v32 = vrot.slane %v236_v23, 4 }
 0x15f   :  { %v292_v33 = vadd.f32 %v1126_v12, %v242_v25  ;;  %v253_v34 = vrot.slane %v252_v26, 1  ;;  %v263_v35 = vrot.slane %v262_v27, 2  ;;  %v273_v36 = vrot.slane %v235_v28, 4 }
 0x160   :  { %v260_v37 = vmax.f32 %v258_v21, %v259_v30  ;;  %v270_v38 = vmax.f32 %v268_v22, %v269_v31  ;;  %v280_v39 = vmax.f32 %v236_v23, %v279_v32  ;;  %v301_v41 = vmax.f32 %v293_v29, 0.0 }
 0x161   :  { %v254_v42 = vmax.f32 %v252_v26, %v253_v34  ;;  %v264_v43 = vmax.f32 %v262_v27, %v263_v35  ;;  %v274_v44 = vmax.f32 %v235_v28, %v273_v36  ;;  %v300_v45 = vmax.f32 %v292_v33, 0.0  ;;  %v587_v34 = vld [vmem:[%s1169_s8] ss:$0 sm:$0xff] }
 0x162   :  { %v295_v46 = vadd.f32 %v1126_v12, %v260_v37  ;;  %v271_v47 = vrot.slane %v270_v38, 1  ;;  %v281_v48 = vrot.slane %v280_v39, 2  ;;  %v423_v52 = vrot.slane %v1121_v3, 3 }
 0x163   :  { %v294_v49 = vadd.f32 %v1126_v12, %v254_v42  ;;  %v265_v50 = vrot.slane %v264_v43, 1  ;;  %v275_v51 = vrot.slane %v274_v44, 2  ;;  %v425_v59 = vrot.slane %v1121_v3, 5 }
 0x164   :  { %v303_v53 = vmax.f32 %v295_v46, 0.0  ;;  %v272_v54 = vmax.f32 %v270_v38, %v271_v47  ;;  %v282_v55 = vmax.f32 %v280_v39, %v281_v48  ;;  %v436_v62 = vadd.f32 %v1121_v3, %v300_v45 }
 0x165   :  { %v302_v56 = vmax.f32 %v294_v49, 0.0  ;;  %v266_v57 = vmax.f32 %v264_v43, %v265_v50  ;;  %v276_v58 = vmax.f32 %v274_v44, %v275_v51  ;;  %v437_v63 = vadd.f32 %v421_v19, %v301_v41 }
 0x166   :  { %v297_v60 = vadd.f32 %v1126_v12, %v272_v54  ;;  %v283_v61 = vrot.slane %v282_v55, 1  ;;  %v439_v4 = vadd.f32 %v423_v52, %v303_v53  ;;  %v424_v10 = vrot.slane %v1121_v3, 4 }
 0x167   :  { %v296_v0 = vadd.f32 %v1126_v12, %v266_v57  ;;  %v277_v1 = vrot.slane %v276_v58, 1  ;;  %v438_v2 = vadd.f32 %v422_v40, %v302_v56  ;;  %v475_v7 = vrot.slane %v437_v63, 7 }
 0x168   :  { %v305_v5 = vmax.f32 %v297_v60, 0.0  ;;  %v284_v6 = vmax.f32 %v282_v55, %v283_v61  ;;  %v481_v16 = vrot.slane %v439_v4, 5  ;;  %v427_v21 = vrot.slane %v1121_v3, 7 }
 0x169   :  { %v304_v8 = vmax.f32 %v296_v0, 0.0  ;;  %v278_v9 = vmax.f32 %v276_v58, %v277_v1  ;;  %v478_v11 = vrot.slane %v438_v2, 6  ;;  %v477_v15 = vsel %vm476_vm1, %v475_v7, %v436_v62 }
 0x16a   :  { %v299_v13 = vadd.f32 %v1126_v12, %v284_v6  ;;  %v441_v14 = vadd.f32 %v425_v59, %v305_v5  ;;  %v426_v24 = vrot.slane %v1121_v3, 6 }
 0x16b   :  { %v298_v17 = vadd.f32 %v1126_v12, %v278_v9  ;;  %v440_v18 = vadd.f32 %v424_v10, %v304_v8  ;;  %v480_v19 = vsel %vm479_vm2, %v478_v11, %v477_v15 }
 0x16c   :  { %v307_v20 = vmax.f32 %v299_v13, 0.0  ;;  %v483_v22 = vsel %vm482_vm3, %v481_v16, %v480_v19  ;;  %v487_v27 = vrot.slane %v441_v14, 3 }
 0x16d   :  { %v306_v23 = vmax.f32 %v298_v17, 0.0  ;;  %v484_v25 = vrot.slane %v440_v18, 4 }
 0x16e   :  { %v443_v26 = vadd.f32 %v427_v21, %v307_v20 }
 0x16f   :  { %v442_v28 = vadd.f32 %v426_v24, %v306_v23  ;;  %v486_v29 = vsel %vm485_vm4, %v484_v25, %v483_v22 }
 0x170   :  { %v489_v30 = vsel %vm488_vm5, %v487_v27, %v486_v29  ;;  %v493_v31 = vrot.slane %v443_v26, 1 }
 0x171   :  { %v490_v12 = vrot.slane %v442_v28, 2 }
 0x173   :  { %v492_v32 = vsel %vm491_vm6, %v490_v12, %v489_v30 }
 0x174   :  { %v495_v33 = vsel %vm494_vm7, %v493_v31, %v492_v32 }
 0x175   :  { %741 = vmatmul.mubr.f32.vlgmr.msra.gmra.mrb[8].mxu0 %v495_v33 }
 0x248   :  { %v563_v3 = vpop.f32.mrb[8].mxu0 }
 0x249   :  { %v564_v35 = vadd.f32 %v587_v34, %v563_v3  ;;  %v742_v36 = vpop.f32.mrb[9].mxu0 }
 0x24b   :  { %567 = vst [vmem:[#allocation11] sm:$0xff] %v564_v35 }
 0x24c   :  { %963 = shalt.err (!%p960_p2)
}
 0x24d   :  { %s964_s13 = scalar_lea.hbm %s1170_s9, 128 }
 0x24e   :  { %p965_p3 = scmp.ne.s32.totalorder %s1170_s9, %s964_s13  ;;  %p968_p4 = scmp.lt.u32.totalorder %s964_s13, %s1170_s9 }
 0x250   :  { %p970_p5 = pnand %p968_p4, %p965_p3 }
 0x252   :  { %973 = shalt.err (!%p970_p5)
}
 0x253   :  { %577 = dma.vmem_to_hbm [thread:$0]  %s575_s29, 128, %s1170_s9, [#allocation4]  }
 0x254   :  { %980 = dma.done.wait [#allocation4], 128  }
 0x255   :  { %981 = vsyncadd [#allocation4], 4294967168 }
 0x256   :  { %581 = vsyncpa [#allocation3], 1 }
 0x257   :  { %582 = vsyncpa [#allocation6], 1 }
 0x258   :  { %583 = vsyncpa [#allocation9], 1 }
 0x259   :  { %584 = vsyncpa [#allocation4], 1 }

</bundles_post_ra>
